<compile_context>
chip_gen: v7x
topology: tpu7x:2x2x1
jax: 0.10.0
libtpu: 0.0.40
codegen_flags: <defaults>
</compile_context>

<pallas_src>
import functools

import jax
import jax.numpy as jnp
from jax.experimental import pallas as pl
from jax.experimental.pallas import tpu as pltpu


def _anet_kernel(x_ref, w_ref, b_ref, out_ref, *, dims, compute_dtype):
    S, H1, H2, A = dims

    # Full loads of the (tiny) packed parameter blocks + this step's batch tile.
    w = w_ref[...]                              # [3, K, N] f32 (VMEM-resident)
    b = b_ref[...]                              # [3, 1, N] f32
    x = x_ref[...].astype(compute_dtype)        # [tb, S]

    w1 = w[0, :S, :H1].astype(compute_dtype)
    w2 = w[1, :H1, :H2].astype(compute_dtype)
    w3 = w[2, :H2, :A].astype(compute_dtype)
    b1 = b[0, :, :H1]
    b2 = b[1, :, :H2]
    b3 = b[2, :, :A]

    # Layer 1: Linear + ReLU (bf16 MXU inputs, f32 accumulation / elementwise)
    h1 = jnp.dot(x, w1, preferred_element_type=jnp.float32) + b1
    h1 = jnp.maximum(h1, 0.0)

    # Layer 2: Linear + ReLU
    h2 = jnp.dot(h1.astype(compute_dtype), w2, preferred_element_type=jnp.float32) + b2
    h2 = jnp.maximum(h2, 0.0)

    # Layer 3: Linear
    logits = jnp.dot(h2.astype(compute_dtype), w3, preferred_element_type=jnp.float32) + b3

    # Softmax along the action axis (dim=1), max-subtracted.
    m = jnp.max(logits, axis=1, keepdims=True)
    e = jnp.exp(logits - m)
    denom = jnp.sum(e, axis=1, keepdims=True)
    inv = pl.reciprocal(denom, approx=True)     # EUP slot instead of VALU divide
    out_ref[...] = (e * inv).astype(out_ref.dtype)


def anet_forward(x, w1, b1, w2, b2, w3, b3, *, block_b=1024, compute_dtype=jnp.bfloat16):
    """x: [B, state_size]; weights stored as [in, out]; biases as [1, out] (or [out])."""
    B, S = x.shape
    H1 = w1.shape[1]
    H2 = w2.shape[1]
    A = w3.shape[1]
    K = max(S, H1, H2)
    N = max(H1, H2, A)

    # --- Pack the six tiny parameter operands into two (fewer DMA descriptors). ---
    w_packed = jnp.zeros((3, K, N), jnp.float32)
    w_packed = w_packed.at[0, :S, :H1].set(w1.astype(jnp.float32))
    w_packed = w_packed.at[1, :H1, :H2].set(w2.astype(jnp.float32))
    w_packed = w_packed.at[2, :H2, :A].set(w3.astype(jnp.float32))

    b_packed = jnp.zeros((3, 1, N), jnp.float32)
    b_packed = b_packed.at[0, :, :H1].set(b1.reshape(1, H1).astype(jnp.float32))
    b_packed = b_packed.at[1, :, :H2].set(b2.reshape(1, H2).astype(jnp.float32))
    b_packed = b_packed.at[2, :, :A].set(b3.reshape(1, A).astype(jnp.float32))

    # --- Batch tiling: rows per step is a multiple of 8 (f32 sublanes), capped. ---
    tb = min(block_b, -(-B // 8) * 8)
    tb = max(8, (tb // 8) * 8)
    num_tiles = -(-B // tb)
    Bp = num_tiles * tb
    x_p = x if Bp == B else jnp.pad(x, ((0, Bp - B), (0, 0)))

    kernel = functools.partial(
        _anet_kernel, dims=(S, H1, H2, A), compute_dtype=compute_dtype
    )

    out = pl.pallas_call(
        kernel,
        out_shape=jax.ShapeDtypeStruct((Bp, A), jnp.float32),
        grid=(num_tiles,),
        in_specs=[
            pl.BlockSpec((tb, S), lambda i: (i, 0)),          # batch tile of x
            pl.BlockSpec((3, K, N), lambda i: (0, 0, 0)),     # weights: VMEM-resident
            pl.BlockSpec((3, 1, N), lambda i: (0, 0, 0)),     # biases:  VMEM-resident
        ],
        out_specs=pl.BlockSpec((tb, A), lambda i: (i, 0)),
        compiler_params=pltpu.CompilerParams(
            dimension_semantics=("parallel",),                # dual-TC sharding on v7x
        ),
    )(x_p, w_packed, b_packed)

    return out[:B] if Bp != B else out


def init_params(key, state_size, action_size, h1_size=16, h2_size=16):
    """Deterministic init mimicking nn.Linear default (uniform +/- 1/sqrt(fan_in))."""
    ks = jax.random.split(key, 6)

    def linear(kw, kb, fan_in, fan_out):
        bound = 1.0 / jnp.sqrt(jnp.float32(fan_in))
        w = jax.random.uniform(kw, (fan_in, fan_out), jnp.float32, -bound, bound)
        b = jax.random.uniform(kb, (1, fan_out), jnp.float32, -bound, bound)
        return w, b

    w1, b1 = linear(ks[0], ks[1], state_size, h1_size)
    w2, b2 = linear(ks[2], ks[3], h1_size, h2_size)
    w3, b3 = linear(ks[4], ks[5], h2_size, action_size)
    return w1, b1, w2, b2, w3, b3


if __name__ == "__main__":
    key = jax.random.PRNGKey(0)
    k_x, k_p = jax.random.split(key)

    batch = 8
    state_size = 8
    action_size = 4
    h1_size = 16
    h2_size = 16

    x = jax.random.normal(k_x, (batch, state_size), jnp.float32)
    params = init_params(k_p, state_size, action_size, h1_size, h2_size)

    out = anet_forward(x, *params)
    out = jax.block_until_ready(out)

    # Reference in plain JAX f32.  The kernel feeds bf16 into the MXU (f32
    # accumulation) and uses the approximate EUP reciprocal, so allow a small
    # tolerance on probabilities in [0, 1].
    w1, b1, w2, b2, w3, b3 = params
    h = jnp.maximum(x @ w1 + b1, 0.0)
    h = jnp.maximum(h @ w2 + b2, 0.0)
    logits = h @ w3 + b3
    ref = jax.nn.softmax(logits, axis=1)

    assert out.shape == (batch, action_size)
    assert jnp.allclose(out, ref, atol=2e-2), "mismatch vs reference"
    assert jnp.allclose(jnp.sum(out, axis=1), 1.0, atol=5e-3)

    print("KERNEL_OK")
</pallas_src>

<mosaic_0001>
module attributes {stable_mosaic.version = 11 : i64} {
  func.func @_anet_kernel(%arg0: i32, %arg1: memref<8x8xf32, #tpu.memory_space<vmem>>, %arg2: memref<3x16x16xf32, #tpu.memory_space<vmem>>, %arg3: memref<3x1x16xf32, #tpu.memory_space<vmem>>, %arg4: memref<8x4xf32, #tpu.memory_space<vmem>>) attributes {dimension_semantics = [#tpu.dimension_semantics<parallel>], iteration_bounds = array<i64: 1>, scalar_prefetch = 0 : i64, scratch_operands = 0 : i64, tpu.core_type = #tpu.core_type<tc>, window_params = [{transform_indices = @transform_0, window_bounds = array<i64: 8, 8>}, {pipeline_mode = #tpu.pipeline_mode<synchronous>, transform_indices = @transform_1, window_bounds = array<i64: 3, 16, 16>}, {pipeline_mode = #tpu.pipeline_mode<synchronous>, transform_indices = @transform_2, window_bounds = array<i64: 3, 1, 16>}, {transform_indices = @transform_3, window_bounds = array<i64: 8, 4>}]} {
    %c0 = arith.constant 0 : index
    %c0_0 = arith.constant 0 : index
    %c0_1 = arith.constant 0 : index
    %0 = vector.load %arg2[%c0, %c0_0, %c0_1] : memref<3x16x16xf32, #tpu.memory_space<vmem>>, vector<3x16x16xf32>
    %c0_2 = arith.constant 0 : index
    %c0_3 = arith.constant 0 : index
    %c0_4 = arith.constant 0 : index
    %1 = vector.load %arg3[%c0_2, %c0_3, %c0_4] : memref<3x1x16xf32, #tpu.memory_space<vmem>>, vector<3x1x16xf32>
    %c0_5 = arith.constant 0 : index
    %c0_6 = arith.constant 0 : index
    %2 = vector.load %arg1[%c0_5, %c0_6] : memref<8x8xf32, #tpu.memory_space<vmem>>, vector<8x8xf32>
    %3 = arith.truncf %2 : vector<8x8xf32> to vector<8x8xbf16>
    %4 = vector.extract_strided_slice %0 {offsets = [0, 0, 0], sizes = [1, 8, 16], strides = [1, 1, 1]} : vector<3x16x16xf32> to vector<1x8x16xf32>
    %5 = vector.shape_cast %4 : vector<1x8x16xf32> to vector<8x16xf32>
    %6 = arith.truncf %5 : vector<8x16xf32> to vector<8x16xbf16>
    %7 = vector.extract_strided_slice %0 {offsets = [1, 0, 0], sizes = [1, 16, 16], strides = [1, 1, 1]} : vector<3x16x16xf32> to vector<1x16x16xf32>
    %8 = vector.shape_cast %7 : vector<1x16x16xf32> to vector<16x16xf32>
    %9 = arith.truncf %8 : vector<16x16xf32> to vector<16x16xbf16>
    %10 = vector.extract_strided_slice %0 {offsets = [2, 0, 0], sizes = [1, 16, 4], strides = [1, 1, 1]} : vector<3x16x16xf32> to vector<1x16x4xf32>
    %11 = vector.shape_cast %10 : vector<1x16x4xf32> to vector<16x4xf32>
    %12 = arith.truncf %11 : vector<16x4xf32> to vector<16x4xbf16>
    %13 = vector.extract_strided_slice %1 {offsets = [0, 0, 0], sizes = [1, 1, 16], strides = [1, 1, 1]} : vector<3x1x16xf32> to vector<1x1x16xf32>
    %14 = vector.shape_cast %13 : vector<1x1x16xf32> to vector<1x16xf32>
    %15 = vector.extract_strided_slice %1 {offsets = [1, 0, 0], sizes = [1, 1, 16], strides = [1, 1, 1]} : vector<3x1x16xf32> to vector<1x1x16xf32>
    %16 = vector.shape_cast %15 : vector<1x1x16xf32> to vector<1x16xf32>
    %17 = vector.extract_strided_slice %1 {offsets = [2, 0, 0], sizes = [1, 1, 4], strides = [1, 1, 1]} : vector<3x1x16xf32> to vector<1x1x4xf32>
    %18 = vector.shape_cast %17 : vector<1x1x4xf32> to vector<1x4xf32>
    %cst = arith.constant dense<0.000000e+00> : vector<8x16xf32>
    %19 = tpu.matmul %3, %6, %cst {dimension_numbers = #tpu.dot_dimension_numbers<[1], [0], [0], [1], [0, 0, 1, 1], [], []>} : vector<8x8xbf16>, vector<8x16xbf16>, vector<8x16xf32> -> vector<8x16xf32>
    %20 = vector.broadcast %14 : vector<1x16xf32> to vector<8x16xf32>
    %21 = arith.addf %19, %20 : vector<8x16xf32>
    %cst_7 = arith.constant 0.000000e+00 : f32
    %22 = vector.broadcast %cst_7 : f32 to vector<8x16xf32>
    %23 = arith.maximumf %21, %22 : vector<8x16xf32>
    %24 = arith.truncf %23 : vector<8x16xf32> to vector<8x16xbf16>
    %cst_8 = arith.constant dense<0.000000e+00> : vector<8x16xf32>
    %25 = tpu.matmul %24, %9, %cst_8 {dimension_numbers = #tpu.dot_dimension_numbers<[1], [0], [0], [1], [0, 0, 1, 1], [], []>} : vector<8x16xbf16>, vector<16x16xbf16>, vector<8x16xf32> -> vector<8x16xf32>
    %26 = vector.broadcast %16 : vector<1x16xf32> to vector<8x16xf32>
    %27 = arith.addf %25, %26 : vector<8x16xf32>
    %cst_9 = arith.constant 0.000000e+00 : f32
    %28 = vector.broadcast %cst_9 : f32 to vector<8x16xf32>
    %29 = arith.maximumf %27, %28 : vector<8x16xf32>
    %30 = arith.truncf %29 : vector<8x16xf32> to vector<8x16xbf16>
    %cst_10 = arith.constant dense<0.000000e+00> : vector<8x4xf32>
    %31 = tpu.matmul %30, %12, %cst_10 {dimension_numbers = #tpu.dot_dimension_numbers<[1], [0], [0], [1], [0, 0, 1, 1], [], []>} : vector<8x16xbf16>, vector<16x4xbf16>, vector<8x4xf32> -> vector<8x4xf32>
    %32 = vector.broadcast %18 : vector<1x4xf32> to vector<8x4xf32>
    %33 = arith.addf %31, %32 : vector<8x4xf32>
    %cst_11 = arith.constant dense<0xFF800000> : vector<8xf32>
    %34 = vector.multi_reduction <maximumf>, %33, %cst_11 [1] : vector<8x4xf32> to vector<8xf32>
    %35 = vector.shape_cast %34 : vector<8xf32> to vector<8x1xf32>
    %36 = vector.broadcast %35 : vector<8x1xf32> to vector<8x4xf32>
    %37 = arith.subf %33, %36 : vector<8x4xf32>
    %38 = math.exp %37 : vector<8x4xf32>
    %cst_12 = arith.constant dense<0.000000e+00> : vector<8xf32>
    %39 = vector.multi_reduction <add>, %38, %cst_12 [1] : vector<8x4xf32> to vector<8xf32>
    %40 = vector.shape_cast %39 : vector<8xf32> to vector<8x1xf32>
    %41 = tpu.reciprocal %40 {approx = true} : vector<8x1xf32> -> vector<8x1xf32>
    %42 = vector.broadcast %41 : vector<8x1xf32> to vector<8x4xf32>
    %43 = arith.mulf %38, %42 : vector<8x4xf32>
    %c0_13 = arith.constant 0 : index
    %c0_14 = arith.constant 0 : index
    %44 = vector.load %arg4[%c0_13, %c0_14] : memref<8x4xf32, #tpu.memory_space<vmem>>, vector<8x4xf32>
    tpu.vector_store %arg4[%c0_13, %c0_14], %43 {strides = array<i32>} : memref<8x4xf32, #tpu.memory_space<vmem>>, vector<8x4xf32>,
    return
  }
  func.func @transform_0(%arg0: i32) -> (i32, i32) {
    %c0_i32 = arith.constant 0 : i32
    %c0_i32_0 = arith.constant 0 : i32
    return %arg0, %c0_i32 : i32, i32
  }
  func.func @transform_1(%arg0: i32) -> (i32, i32, i32) {
    %c0_i32 = arith.constant 0 : i32
    %c0_i32_0 = arith.constant 0 : i32
    %c0_i32_1 = arith.constant 0 : i32
    %c0_i32_2 = arith.constant 0 : i32
    return %c0_i32, %c0_i32_0, %c0_i32_1 : i32, i32, i32
  }
  func.func @transform_2(%arg0: i32) -> (i32, i32, i32) {
    %c0_i32 = arith.constant 0 : i32
    %c0_i32_0 = arith.constant 0 : i32
    %c0_i32_1 = arith.constant 0 : i32
    %c0_i32_2 = arith.constant 0 : i32
    return %c0_i32, %c0_i32_0, %c0_i32_1 : i32, i32, i32
  }
  func.func @transform_3(%arg0: i32) -> (i32, i32) {
    %c0_i32 = arith.constant 0 : i32
    %c0_i32_0 = arith.constant 0 : i32
    return %arg0, %c0_i32 : i32, i32
  }
}

</mosaic_0001>

<bundles_post_ra>
// kernel: tpu_custom_call.1
= control target key start
LH: loop header
LB: loop body
LE: loop exit
PB: predicated region body
PF: predicated region fallthrough
CT: control target
= control target key end

     0   :  { %8 = vsyncpa [#allocation3], 0  ;;  %s390_s0 = inlined_call_operand.hbm [shape: f32[8,8], index: 0, kind: input, shape index: {}]   ;;  %s391_s1 = inlined_call_operand.hbm [shape: f32[3,16,16], index: 1, kind: input, shape index: {}]   ;;  %s392_s2 = inlined_call_operand.vmem [shape: f32[3,1,16], index: 2, kind: input, shape index: {}]   ;;  %s393_s3 = inlined_call_operand.vmem [shape: f32[8,4], index: 3, kind: output, shape index: {}]  }
   0x1   :  { %9 = vsyncpa [#allocation5], 0  ;;  %s318_s12 = smov [#allocation2]   ;;  %s319_s14 = smov [#allocation4]  }
   0x2   :  { %s16_s13 = sshll.u32 %s318_s12, 4  ;;  %s25_s15 = sshll.u32 %s319_s14, 4  ;;  %s17_s13 = int_to_ptr.vmem [resolvable:$true] %s16_s13  ;;  %s344_s15 = int_to_ptr.vmem [resolvable:$true] %s25_s15 }
   0x3   :  { %s270_s18 = scalar_lea.hbm %s390_s0, 128 }
   0x4   :  { %p271_p0 = scmp.ne.s32.totalorder %s390_s0, %s270_s18  ;;  %p274_p1 = scmp.lt.u32.totalorder %s270_s18, %s390_s0 }
   0x6   :  { %p276_p2 = pnand %p274_p1, %p271_p0 }
   0x8   :  { %279 = shalt.err (!%p276_p2)
}
   0x9   :  { %s280_s23 = scalar_lea.vmem %s17_s13, 128  ;;  %p285_p4 = scmp.lt.s32.totalorder %s17_s13, %s17_s13 }
   0xa   :  { %p281_p3 = scmp.ne.s32.totalorder %s17_s13, %s280_s23  ;;  %p286_p5 = scmp.lt.s32.totalorder %s280_s23, %s280_s23 }
   0xc   :  { %p287_p6 = por %p286_p5, %p285_p4 }
   0xe   :  { %p288_p7 = pnand %p287_p6, %p281_p3 }
  0x10   :  { %291 = shalt.err (!%p288_p7)
}
  0x11   :  { %19 = dma.hbm_to_vmem [thread:$0]  %s390_s0, 128, %s17_s13, [#allocation3]  }
  0x12   :  { %s292_s28 = scalar_lea.hbm %s391_s1, 768 }
  0x13   :  { %p293_p8 = scmp.ne.s32.totalorder %s391_s1, %s292_s28  ;;  %p296_p9 = scmp.lt.u32.totalorder %s292_s28, %s391_s1 }
  0x15   :  { %p298_p10 = pnand %p296_p9, %p293_p8 }
  0x17   :  { %301 = shalt.err (!%p298_p10)
}
  0x18   :  { %s302_s6 = scalar_lea.vmem %s344_s15, 768  ;;  %p307_p12 = scmp.lt.s32.totalorder %s344_s15, %s344_s15 }
  0x19   :  { %p303_p11 = scmp.ne.s32.totalorder %s344_s15, %s302_s6  ;;  %p308_p13 = scmp.lt.s32.totalorder %s302_s6, %s302_s6 }
  0x1b   :  { %p309_p0 = por %p308_p13, %p307_p12 }
  0x1d   :  { %p310_p1 = pnand %p309_p0, %p303_p11 }
  0x1f   :  { %313 = shalt.err (!%p310_p1)
}
  0x20   :  { %s320_s0 = smov 128   ;;  %s321_s7 = smov 8  }
  0x21   :  { %31 = dma.hbm_to_vmem [thread:$0]  %s391_s1, 768, %s344_s15, [#allocation5], %s320_s0, %s320_s0, %s321_s7  }
  0x22   :  { %314 = dma.done.wait [#allocation3], 128  }
  0x23   :  { %315 = vsyncadd [#allocation3], 4294967168 }
  0x24   :  { %316 = dma.done.wait [#allocation5], 768  }
  0x25   :  { %317 = vsyncadd [#allocation5], 4294966528  ;;  %v322_v0 = vmov 0.0   ;;  %vm323_vm0 = vmmov 0   ;;  %v41_v1 = vld [vmem:[#allocation4] sm:$0xff]  ;;  %vm64_vm1 = vcmask 1043456  }
  0x26   :  { %242 = vmatprep.subr.bf16.mxu0 %v322_v0  ;;  %244 = vmatprep.mubr.msk.bf16.mxu0 %vm323_vm0, %v322_v0  ;;  %v49_v2 = vld [vmem:[#allocation2] sm:$0xff]  ;;  %v51_v3 = vpack.c.bf16 %v41_v1, %v41_v1  ;;  %vm60_vm2 = vcmask 64512   ;;  %v42_v6 = vld [vmem:[#allocation4 + $0x10] sm:$0xff]  ;;  %v44_v9 = vld [vmem:[#allocation4 + $0x20] sm:$0xff]  ;;  %vm116_vm3 = vcmask 130048   ;;  %vm211_vm4 = vcmask 31744  }
  0x27   :  { %248 = vmatprep.subr.bf16.mxu1 %v322_v0  ;;  %250 = vmatprep.mubr.msk.bf16.mxu1 %vm323_vm0, %v322_v0  ;;  %v50_v5 = vpack.c.bf16 %v49_v2, %v49_v2  ;;  %v43_v7 = vld [vmem:[#allocation4 + $0x18] sm:$0xff]  ;;  %v45_v10 = vld [vmem:[#allocation4 + $0x28] sm:$0xff]  ;;  %v230_v12 = vld [vmem:[%s392_s2] ss:$0 sm:$0xff] }
  0x28   :  { %v66_v4 = vsel %vm64_vm1, %v51_v3, 0  ;;  %v52_v8 = vpack.c.bf16 %v43_v7, %v42_v6  ;;  %v53_v11 = vpack.c.bf16 %v45_v10, %v44_v9  ;;  %v232_v20 = vld [vmem:[%s392_s2 + $0x1] ss:$0 sm:$0xff]  ;;  %v234_v28 = vld [vmem:[%s392_s2 + $0x2] ss:$0 sm:$0xff] }
  0x29   :  { %243 = vmatpush3.bf16.msra.mxu0 %v66_v4 }
  0x2a   :  { %254 = vmatprep.subr.bf16.mxu0 %v322_v0  ;;  %249 = vmatpush3.bf16.msra.mxu1 %v52_v8 }
  0x2c   :  { %245 = vmatmul.mubr.msk.bf16.vlgmr.msra.gmra.mrb[0].mxu0 %vm60_vm2, %v50_v5 }
  0x2d   :  { %256 = vmatprep.mubr.msk.bf16.mxu0 %vm323_vm0, %v322_v0  ;;  %255 = vmatpush3.bf16.msra.mxu0 %v53_v11 }
  0xff   :  { %v102_v13 = vpop.f32.mrb[0].mxu0 }
 0x100   :  { %v103_v14 = vadd.f32 %v230_v12, %v102_v13  ;;  %v246_v15 = vpop.f32.mrb[1].mxu0 }
 0x101   :  { %v105_v16 = vpop.f32.mrb[2].mxu0 }
 0x102   :  { %v108_v17 = vmax.f32 %v103_v14, 0.0  ;;  %v247_v18 = vpop.f32.mrb[3].mxu0 }
 0x104   :  { %v109_v19 = vpack.c.bf16 %v108_v17, %v108_v17 }
 0x106   :  { %251 = vmatmul.mubr.msk.bf16.vlgmr.msra.gmra.mrb[0].mxu1 %vm116_vm3, %v109_v19 }
 0x1d9   :  { %v154_v21 = vpop.f32.mrb[0].mxu1 }
 0x1da   :  { %v155_v22 = vadd.f32 %v232_v20, %v154_v21  ;;  %v252_v23 = vpop.f32.mrb[1].mxu1 }
 0x1db   :  { %v157_v24 = vpop.f32.mrb[2].mxu1 }
 0x1dc   :  { %v160_v25 = vmax.f32 %v155_v22, 0.0  ;;  %v253_v26 = vpop.f32.mrb[3].mxu1 }
 0x1de   :  { %v161_v27 = vpack.c.bf16 %v160_v25, %v160_v25 }
 0x1e0   :  { %257 = vmatmul.mubr.msk.bf16.vlgmr.msra.gmra.mrb[4].mxu0 %vm116_vm3, %v161_v27 }
 0x2b3   :  { %v205_v29 = vpop.f32.mrb[4].mxu0 }
 0x2b4   :  { %v206_v30 = vadd.f32 %v234_v28, %v205_v29  ;;  %v258_v31 = vpop.f32.mrb[5].mxu0 }
 0x2b5   :  { %v208_v32 = vpop.f32.mrb[6].mxu0 }
 0x2b6   :  { %v259_v33 = vpop.f32.mrb[7].mxu0  ;;  %v212_v34 = vsel %vm211_vm4, %v206_v30, -inf }
 0x2b7   :  { %213 = vmax.xlane.f32.xlu0 %v212_v34 }
 0x344   :  { %v214_v35 = vpop.xlane.xlu0 %213 }
 0x345   :  { %v215_v36 = vsub.f32 %v206_v30, %v214_v35 }
 0x347   :  { %v216_v37 = vmul.f32 1.442695, %v215_v36 }
 0x349   :  { %266 = vpow2.f32 %v216_v37 }
 0x353   :  { %v267_v38 = vpop.eup %266 }
 0x354   :  { %v218_v39 = vsel %vm211_vm4, %v267_v38, 0.0 }
 0x355   :  { %219 = vadd.xlane.f32.xlu0 %v218_v39 }
 0x3e2   :  { %v220_v40 = vpop.xlane.xlu0 %219 }
 0x3e3   :  { %268 = vrcp.f32 %v220_v40 }
 0x3ed   :  { %v269_v41 = vpop.eup %268 }
 0x3ee   :  { %v222_v42 = vmul.f32 %v269_v41, %v267_v38 }
 0x3f0   :  { %223 = vst.msk [vmem:[%s393_s3] sm:$0xff] %vm211_vm4, %v222_v42 }
 0x3f1   :  { %228 = vsyncpa [#allocation3], 1 }
 0x3f2   :  { %229 = vsyncpa [#allocation5], 1 }

</bundles_post_ra>
